<compile_context>
chip_gen: v5e
topology: v5e:2x2
jax: 0.10.0
libtpu: 0.0.40
codegen_flags: <defaults>
</compile_context>

<pallas_src>
import functools

import jax
import jax.numpy as jnp
from jax.experimental import pallas as pl
from jax.experimental.pallas import tpu as pltpu


# ----------------------------- config helpers ------------------------------

def round_filters(filters, cfg):
    """EfficientNet-style channel rounding (width multiplier, divisor 8)."""
    mult = cfg.get("width_coefficient", 1.0)
    divisor = cfg.get("depth_divisor", 8)
    filters = filters * mult
    new_f = max(divisor, int(filters + divisor / 2) // divisor * divisor)
    if new_f < 0.9 * filters:
        new_f += divisor
    return int(new_f)


def _round_up(x, m):
    return (x + m - 1) // m * m


def _pick_m_tile(m_blk, cout_pad):
    """Largest multiple-of-8 divisor of m_blk keeping the live (m_tile, cout_pad)
    f32 result tile <= ~32 vregs (128 KiB)."""
    cap = max(8, (128 * 1024) // (cout_pad * 4))
    if m_blk <= cap or m_blk % 8 != 0:
        return m_blk
    best = 8
    d = 8
    while d <= cap:
        if m_blk % d == 0:
            best = d
        d += 8
    return best


def _choose_tb(n):
    """Images per grid step: amortize per-step overhead but keep grid >= 2 (v7x TCs)."""
    if n >= 16:
        return 8
    if n >= 2:
        return max(1, n // 2)
    return 1


# ----------------------------- Pallas kernel --------------------------------

def _stem_matmul_kernel(p_ref, w_ref, b_ref, o_ref, *, act, m_tile, use_bf16):
    """Fused conv-as-matmul + bias + SiLU for one block of TB images.

    p_ref: (M_BLK, 9*Cin)      im2col patches (rows = TB * Ho*Wo_pad)
    w_ref: (9*Cin, COUT_PAD)   BN-scale-folded conv weights, lane-padded
    b_ref: (1, COUT_PAD)       folded BN bias (zero in the pad lanes)
    o_ref: (M_BLK, COUT_PAD)
    """
    m_blk = p_ref.shape[0]
    w = w_ref[...]
    b = b_ref[...]
    if use_bf16:
        w = w.astype(jnp.bfloat16)

    def _chunk(m0):
        x = p_ref[pl.ds(m0, m_tile), :]
        if use_bf16:
            x = x.astype(jnp.bfloat16)
        y = jnp.dot(x, w, preferred_element_type=jnp.float32)   # single K=9*Cin matmul
        y = y + b                                                # f32 epilogue
        if act:
            y = y * jax.nn.sigmoid(y)                            # SiLU
        o_ref[pl.ds(m0, m_tile), :] = y.astype(o_ref.dtype)      # lane-dense store

    num_tiles = m_blk // m_tile
    if num_tiles == 1:
        _chunk(0)
    else:
        def body(i, carry):
            _chunk(pl.multiple_of(i * m_tile, m_tile))
            return carry
        jax.lax.fori_loop(0, num_tiles, body, 0, unroll=True)


# ----------------------------- wrappers ---------------------------------------

def steam_forward_nhwc(x_nhwc, w_oihw, bn, cfg, *, batch_block=None,
                       use_bf16_matmul=False):
    """NHWC fast path. x: (N, H, W, Cin); w: (Cout, Cin, 3, 3);
    bn = (gamma, beta, mean, var, eps). Returns (N, Ho, Wo, Cout)."""
    act = cfg.get("act_fn", "silu") == "silu"
    gamma, beta, mean, var, eps = bn
    scale = gamma / jnp.sqrt(var + eps)
    bias = beta - mean * scale

    N, H, W, Cin = x_nhwc.shape
    Cout = w_oihw.shape[0]
    Ho = (H - 1) // 2 + 1                      # stride 2, pad 1 (handles odd H/W)
    Wo = (W - 1) // 2 + 1

    K9 = 9 * Cin
    COUT_PAD = _round_up(Cout, 128)

    # Fold BN scale into conv weights; OIHW -> (3,3,Cin,Cout) -> (9*Cin, Cout),
    # then zero-pad the lane dim to 128 (bias pad MUST be 0 so padded lanes stay 0).
    w_folded = w_oihw.astype(jnp.float32) * scale[:, None, None, None]
    w9 = jnp.transpose(w_folded, (2, 3, 1, 0)).reshape(K9, Cout)
    w9 = jnp.pad(w9, ((0, 0), (0, COUT_PAD - Cout)))
    b2 = jnp.pad(bias.astype(jnp.float32).reshape(1, Cout),
                 ((0, 0), (0, COUT_PAD - Cout)))

    # Host-side im2col: every stride-2 3x3 tap becomes a contiguous K-slab.
    xp = jnp.pad(x_nhwc.astype(jnp.float32), ((0, 0), (1, 1), (1, 1), (0, 0)))
    taps = [xp[:, dh:dh + 2 * Ho - 1:2, dw:dw + 2 * Wo - 1:2, :]
            for dh in range(3) for dw in range(3)]
    patches = jnp.concatenate(taps, axis=-1)                   # (N, Ho, Wo, 9*Cin)

    M_img = Ho * Wo
    M_img_pad = _round_up(M_img, 8)                            # sublane alignment
    patches = patches.reshape(N, M_img, K9)
    if M_img_pad != M_img:
        patches = jnp.pad(patches, ((0, 0), (0, M_img_pad - M_img), (0, 0)))

    TB = batch_block or _choose_tb(N)
    N_pad = _round_up(N, TB)
    if N_pad != N:
        patches = jnp.pad(patches, ((0, N_pad - N), (0, 0), (0, 0)))
    patches = patches.reshape(N_pad * M_img_pad, K9)

    M_BLK = TB * M_img_pad
    m_tile = _pick_m_tile(M_BLK, COUT_PAD)

    out2d = pl.pallas_call(
        functools.partial(_stem_matmul_kernel, act=act, m_tile=m_tile,
                          use_bf16=use_bf16_matmul),
        out_shape=jax.ShapeDtypeStruct((N_pad * M_img_pad, COUT_PAD), jnp.float32),
        grid=(N_pad // TB,),
        in_specs=[
            pl.BlockSpec((M_BLK, K9), lambda n: (n, 0)),          # one DMA per step
            pl.BlockSpec((K9, COUT_PAD), lambda n: (0, 0)),
            pl.BlockSpec((1, COUT_PAD), lambda n: (0, 0)),
        ],
        out_specs=pl.BlockSpec((M_BLK, COUT_PAD), lambda n: (n, 0)),
        compiler_params=pltpu.CompilerParams(
            dimension_semantics=("parallel",),
            vmem_limit_bytes=32 * 1024 * 1024,
        ),
    )(patches, w9, b2)

    out = out2d.reshape(N_pad, M_img_pad, COUT_PAD)[:N, :M_img, :Cout]
    return out.reshape(N, Ho, Wo, Cout)


def steam_forward(x_nchw, w_oihw, bn, cfg, **kw):
    """NCHW adapter matching the PyTorch module's I/O layout."""
    x_nhwc = jnp.transpose(x_nchw, (0, 2, 3, 1))
    y = steam_forward_nhwc(x_nhwc, w_oihw, bn, cfg, **kw)
    return jnp.transpose(y, (0, 3, 1, 2))


# ----------------------------- pure-JAX reference ----------------------------

def reference(x_nchw, w_oihw, bn, cfg):
    gamma, beta, mean, var, eps = bn
    y = jax.lax.conv_general_dilated(
        x_nchw.astype(jnp.float32), w_oihw.astype(jnp.float32),
        window_strides=(2, 2), padding=((1, 1), (1, 1)),
        dimension_numbers=("NCHW", "OIHW", "NCHW"))
    s = (gamma / jnp.sqrt(var + eps))[None, :, None, None]
    b = (beta - mean * gamma / jnp.sqrt(var + eps))[None, :, None, None]
    y = y * s + b
    if cfg.get("act_fn", "silu") == "silu":
        y = y * jax.nn.sigmoid(y)
    return y


# ----------------------------- main ------------------------------------------

if __name__ == "__main__":
    cfg = dict(act_fn="silu", width_coefficient=1.0, depth_divisor=8)
    inp_channels, out_channels = 4, 32
    cout = round_filters(out_channels, cfg)                      # -> 32

    key = jax.random.PRNGKey(0)
    kx, kw, kg, kb, km, kv = jax.random.split(key, 6)
    x = jax.random.normal(kx, (2, inp_channels, 16, 16), jnp.float32)   # NCHW
    w = jax.random.normal(kw, (cout, inp_channels, 3, 3), jnp.float32) * 0.2
    gamma = 1.0 + 0.1 * jax.random.normal(kg, (cout,), jnp.float32)
    beta = 0.05 * jax.random.normal(kb, (cout,), jnp.float32)
    mean = 0.1 * jax.random.normal(km, (cout,), jnp.float32)
    var = 1.0 + 0.1 * jax.random.uniform(kv, (cout,), jnp.float32)
    bn = (gamma, beta, mean, var, 1e-3)

    out = steam_forward(x, w, bn, cfg)
    out = jax.block_until_ready(out)

    ref = reference(x, w, bn, cfg)
    assert out.shape == ref.shape == (2, cout, 8, 8), out.shape
    max_err = float(jnp.max(jnp.abs(out - ref)))
    assert jnp.allclose(out, ref, atol=1e-4, rtol=1e-4), max_err

    print("KERNEL_OK")
</pallas_src>

<mosaic_0001>
module attributes {stable_mosaic.version = 11 : i64} {
  func.func @_stem_matmul_kernel(%arg0: i32, %arg1: memref<64x36xf32, #tpu.memory_space<vmem>>, %arg2: memref<36x128xf32, #tpu.memory_space<vmem>>, %arg3: memref<1x128xf32, #tpu.memory_space<vmem>>, %arg4: memref<64x128xf32, #tpu.memory_space<vmem>>) attributes {dimension_semantics = [#tpu.dimension_semantics<parallel>], iteration_bounds = array<i64: 2>, scalar_prefetch = 0 : i64, scratch_operands = 0 : i64, tpu.core_type = #tpu.core_type<tc>, window_params = [{transform_indices = @transform_0, window_bounds = array<i64: 64, 36>}, {pipeline_mode = #tpu.pipeline_mode<synchronous>, transform_indices = @transform_1, window_bounds = array<i64: 36, 128>}, {pipeline_mode = #tpu.pipeline_mode<synchronous>, transform_indices = @transform_2, window_bounds = array<i64: 1, 128>}, {transform_indices = @transform_3, window_bounds = array<i64: 64, 128>}]} {
    %c0 = arith.constant 0 : index
    %c0_0 = arith.constant 0 : index
    %0 = vector.load %arg2[%c0, %c0_0] : memref<36x128xf32, #tpu.memory_space<vmem>>, vector<36x128xf32>
    %c0_1 = arith.constant 0 : index
    %c0_2 = arith.constant 0 : index
    %1 = vector.load %arg3[%c0_1, %c0_2] : memref<1x128xf32, #tpu.memory_space<vmem>>, vector<1x128xf32>
    %c0_3 = arith.constant 0 : index
    %c0_4 = arith.constant 0 : index
    %2 = vector.load %arg1[%c0_3, %c0_4] : memref<64x36xf32, #tpu.memory_space<vmem>>, vector<64x36xf32>
    %cst = arith.constant dense<0.000000e+00> : vector<64x128xf32>
    %3 = tpu.matmul %2, %0, %cst {dimension_numbers = #tpu.dot_dimension_numbers<[1], [0], [0], [1], [0, 0, 1, 1], [], []>} : vector<64x36xf32>, vector<36x128xf32>, vector<64x128xf32> -> vector<64x128xf32>
    %4 = vector.broadcast %1 : vector<1x128xf32> to vector<64x128xf32>
    %5 = arith.addf %3, %4 : vector<64x128xf32>
    %6 = arith.negf %5 : vector<64x128xf32>
    %7 = math.exp %6 : vector<64x128xf32>
    %cst_5 = arith.constant 1.000000e+00 : f32
    %8 = vector.broadcast %cst_5 : f32 to vector<64x128xf32>
    %9 = arith.addf %8, %7 : vector<64x128xf32>
    %10 = arith.divf %8, %9 : vector<64x128xf32>
    %11 = arith.mulf %5, %10 : vector<64x128xf32>
    %c0_6 = arith.constant 0 : index
    %c0_7 = arith.constant 0 : index
    %12 = vector.load %arg4[%c0_6, %c0_7] : memref<64x128xf32, #tpu.memory_space<vmem>>, vector<64x128xf32>
    tpu.vector_store %arg4[%c0_6, %c0_7], %11 {strides = array<i32>} : memref<64x128xf32, #tpu.memory_space<vmem>>, vector<64x128xf32>,
    return
  }
  func.func @transform_0(%arg0: i32) -> (i32, i32) {
    %c0_i32 = arith.constant 0 : i32
    %c0_i32_0 = arith.constant 0 : i32
    return %arg0, %c0_i32 : i32, i32
  }
  func.func @transform_1(%arg0: i32) -> (i32, i32) {
    %c0_i32 = arith.constant 0 : i32
    %c0_i32_0 = arith.constant 0 : i32
    %c0_i32_1 = arith.constant 0 : i32
    return %c0_i32, %c0_i32_0 : i32, i32
  }
  func.func @transform_2(%arg0: i32) -> (i32, i32) {
    %c0_i32 = arith.constant 0 : i32
    %c0_i32_0 = arith.constant 0 : i32
    %c0_i32_1 = arith.constant 0 : i32
    return %c0_i32, %c0_i32_0 : i32, i32
  }
  func.func @transform_3(%arg0: i32) -> (i32, i32) {
    %c0_i32 = arith.constant 0 : i32
    %c0_i32_0 = arith.constant 0 : i32
    return %arg0, %c0_i32 : i32, i32
  }
}

</mosaic_0001>

<bundles_post_ra>
// kernel: tpu_custom_call.1
= control target key start
LH: loop header
LB: loop body
LE: loop exit
PB: predicated region body
PF: predicated region fallthrough
CT: control target
= control target key end

     0   :  { %8 = vsyncpa [#allocation3], 0  ;;  %s949_s0 = inlined_call_operand.vmem [shape: f32[128,36], index: 0, kind: input, shape index: {}]   ;;  %s950_s1 = inlined_call_operand.vmem [shape: f32[36,128], index: 1, kind: input, shape index: {}]   ;;  %s951_s2 = inlined_call_operand.vmem [shape: f32[1,128], index: 2, kind: input, shape index: {}]   ;;  %s952_s3 = inlined_call_operand.hbm [shape: f32[128,128], index: 3, kind: output, shape index: {}]  }
   0x1   :  { %10 = vsyncpa [#allocation3 + $0x1], 0  ;;  %s710_s12 = smov 0   ;;  %s712_s13 = smov 0  }
   0x2   :  { %s714_s14 = smov 0   ;;  %s716_s15 = smov 0  }
   0x3 LB: > { %s731_s16 = sadd.s32 4294967295, %s686_s15   ;;  %s505_s17 = sadd.s32 4294967294, %s686_s15   ;;  %s686_s15 = sphi %s716_s15, %s966_s15   ;;  %s682_s14 = sphi %s714_s14, %s965_s14   ;;  %s678_s13 = sphi %s712_s13, %s964_s13   ;;  %s674_s12 = sphi %s710_s12, %s963_s12  }
   0x4   : > { %s735_s18 = sadd.s32 1, %s686_s15   ;;  %s91_s19 = sadd.s32 1, %s682_s14 }
   0x5   : > { %s88_s20 = ssub.s32 %s686_s15, %s735_s18  ;;  %p101_p0 = scmp.ne.s32.totalorder %s682_s14, %s678_s13 }
   0x6   : > { %p89_p1 = scmp.eq.s32.totalorder %s88_s20, 0  ;;  %p102_p2 = scmp.eq.s32.totalorder %s731_s16, 1 }
   0x7   : > { %p107_p3 = scmp.ne.s32.totalorder %s678_s13, %s674_s12  ;;  %p108_p4 = scmp.eq.s32.totalorder %s505_s17, 1 }
   0x8   : > { %s746_s21 = scalar_select %p89_p1, %s682_s14, %s91_s19  }
   0x9   : > { %p748_p5 = por %p102_p2, %p101_p0  ;;  %p752_p6 = por %p108_p4, %p107_p3 }
   0xa   : > { %p508_p7 = scmp.ge.s32.totalorder %s686_s15, 1  ;;  %p141_p8 = scmp.lt.s32.totalorder %s686_s15, 3 }
   0xc   : > { %p142_p9 = pnand %p508_p7, %p141_p8 }
   0xd   : > { %s510_s28 = sshll.u32 (!%p142_p9), %s731_s16, 3  ;;  %s162_s20 = sand.u32 (!%p142_p9), 1, %s678_s13  }
   0xe   : > { %145 = sbr.rel (%p142_p9) target bundleno = 213 (0xd5), region = 32  ;;  %p166_p10 = scmp.lt.s32.totalorder (!%p142_p9), %s510_s28, 15 }
   0xf   : > { %s833_s24 = sshll.u32 (!%p142_p9), %s162_s20, 6  ;;  %s534_s26 = sshll.u32 (!%p142_p9), %s731_s16, 6 }
  0x10   : > { %s859_s25 = scalar_lea.vmem (!%p142_p9), [#allocation2], %s833_s24  ;;  %s439_s29 = scalar_lea.hbm (!%p142_p9), %s952_s3, %s534_s26 }
  0x11   : > { %s440_s16 = sshll.u32 (!%p142_p9), %s859_s25, 4  ;;  %s442_s30 = sshll.u32 (!%p142_p9), %s439_s29, 4  ;;  %s441_s16 = int_to_ptr.vmem [resolvable:$true] %s440_s16  ;;  %s443_s30 = int_to_ptr.hbm [resolvable:$true] %s442_s30 }
  0x12   : > { %s428_s4 = scalar_lea.sflag (!%p142_p9), [#allocation3], %s162_s20  ;;  %s638_s5 = sshra.s32 (!%p142_p9), %s443_s30, 4  ;;  %s639_s5 = int_to_ptr.hbm [resolvable:$true] %s638_s5 }
  0x13   : > { %v176_v0 = vld [vmem:[%s950_s1 + $0x20] sm:$0xf]  ;;  %vm214_vm0 = vcmask 1043456   ;;  %v175_v1 = vld [vmem:[%s950_s1 + $0x18] sm:$0xff]  ;;  %v174_v2 = vld [vmem:[%s950_s1 + $0x10] sm:$0xff]  ;;  %s968_s28 = smov (!%p166_p10, %s510_s28), 15  ;;  %p645_p0 = scmp.lt.s32.totalorder %s639_s5, %s952_s3 }
  0x14   : > { %512 = vmatpush.msk.msra.mxu0 %vm214_vm0, %v176_v0  ;;  %535 = vmatpush.msk.msra.mxu1 %vm214_vm0, %v176_v0  ;;  %v173_v3 = vld [vmem:[%s950_s1 + $0x8] sm:$0xff]  ;;  %s511_s6 = sshll.u32 %s968_s28, 3  ;;  %v172_v4 = vld [vmem:[%s950_s1] sm:$0xff]  ;;  %vm189_vm1 = vcmask 293888   ;;  %s644_s9 = scalar_lea.hbm %s952_s3, 128 }
  0x15   : > { %536 = vmatpush.msk.msra.mxu2 %vm214_vm0, %v176_v0  ;;  %537 = vmatpush.msk.msra.mxu3 %vm214_vm0, %v176_v0  ;;  %s169_s11 = scalar_lea.vmem %s949_s0, %s511_s6  ;;  %v591_v13 = vld [vmem:[%s951_s2] ss:$0 sm:$0xff]  ;;  %s640_s6 = scalar_lea.hbm %s639_s5, 64 }
  0x16   : > { %230 = vmatpush.msra.mxu0 %v175_v1  ;;  %538 = vmatpush.msra.mxu1 %v175_v1  ;;  %v178_v5 = vld [vmem:[%s169_s11] sm:$0xff]  ;;  %v180_v6 = vld [vmem:[%s169_s11 + $0x10] sm:$0xff]  ;;  %v179_v9 = vld [vmem:[%s169_s11 + $0x8] sm:$0xff]  ;;  %p641_p11 = scmp.ne.s32.totalorder %s639_s5, %s640_s6  ;;  %p646_p1 = scmp.lt.s32.totalorder %s644_s9, %s640_s6 }
  0x17   : > { %539 = vmatpush.msra.mxu2 %v175_v1  ;;  %540 = vmatpush.msra.mxu3 %v175_v1  ;;  %v182_v7 = vld [vmem:[%s169_s11 + $0x20] sm:$0xff]  ;;  %v184_v8 = vld [vmem:[%s169_s11 + $0x30] sm:$0xff]  ;;  %v181_v10 = vld [vmem:[%s169_s11 + $0x18] sm:$0xff] }
  0x18   : > { %231 = vmatpush.msra.mxu0 %v174_v2  ;;  %541 = vmatpush.msra.mxu1 %v174_v2  ;;  %v183_v11 = vld [vmem:[%s169_s11 + $0x28] sm:$0xff]  ;;  %v185_v12 = vld [vmem:[%s169_s11 + $0x38] sm:$0xff]  ;;  %p642_p12 = pnand %p641_p11, %p748_p5  ;;  %p647_p2 = por %p646_p1, %p645_p0 }
  0x19   : > { %542 = vmatpush.msra.mxu2 %v174_v2  ;;  %543 = vmatpush.msra.mxu3 %v174_v2 }
  0x1a   : > { %232 = vmatpush.msra.mxu0 %v173_v3  ;;  %544 = vmatpush.msra.mxu1 %v173_v3  ;;  %p643_p13 = pneg %p642_p12 }
  0x1b   : > { %545 = vmatpush.msra.mxu2 %v173_v3  ;;  %546 = vmatpush.msra.mxu3 %v173_v3 }
  0x1c   : > { %233 = vmatpush.msra.mxu0 %v172_v4  ;;  %547 = vmatpush.msra.mxu1 %v172_v4  ;;  %p648_p3 = pnand %p647_p2, %p643_p13 }
  0x1d   : > { %548 = vmatpush.msra.mxu2 %v172_v4  ;;  %549 = vmatpush.msra.mxu3 %v172_v4 }
  0x1e   : > { %513 = vmatmul.msk.f32.vlgmr.msra.gmra.mxu0 %vm189_vm1, %v178_v5  ;;  %515 = vmatmul.msk.f32.vlgmr.msra.gmra.mxu1 %vm189_vm1, %v180_v6 }
  0x1f   : > { %517 = vmatmul.msk.f32.vlgmr.msra.gmra.mxu2 %vm189_vm1, %v182_v7  ;;  %519 = vmatmul.msk.f32.vlgmr.msra.gmra.mxu3 %vm189_vm1, %v184_v8 }
  0x26   : > { %514 = vmatmul.msk.f32.gmra.mxu0 %vm189_vm1, %v179_v9  ;;  %516 = vmatmul.msk.f32.gmra.mxu1 %vm189_vm1, %v181_v10 }
  0x27   : > { %518 = vmatmul.msk.f32.gmra.mxu2 %vm189_vm1, %v183_v11  ;;  %520 = vmatmul.msk.f32.gmra.mxu3 %vm189_vm1, %v185_v12 }
  0x9b   : > { %v235_v14 = vpop.f32.mrf.mxu0  ;;  %v241_v15 = vpop.f32.mrf.mxu1 }
  0x9c   : > { %v788_v16 = vadd.f32 %v591_v13, %v235_v14  ;;  %v790_v17 = vadd.f32 %v591_v13, %v241_v15 }
  0x9e   : > { %v521_v18 = vmul.f32 -1.442695, %v788_v16  ;;  %v523_v19 = vmul.f32 -1.442695, %v790_v17 }
  0xa0   : > { %592 = vpow2.f32 %v521_v18 }
  0xa1   : > { %594 = vpow2.f32 %v523_v19 }
  0xa2   : > { %v247_v20 = vpop.f32.mrf.mxu2  ;;  %v253_v21 = vpop.f32.mrf.mxu3 }
  0xa3   : > { %v794_v22 = vadd.f32 %v591_v13, %v247_v20  ;;  %v796_v23 = vadd.f32 %v591_v13, %v253_v21  ;;  %v238_v24 = vpop.f32.mrf.mxu0  ;;  %v244_v25 = vpop.f32.mrf.mxu1 }
  0xa4   : > { %v798_v26 = vadd.f32 %v591_v13, %v238_v24  ;;  %v800_v27 = vadd.f32 %v591_v13, %v244_v25 }
  0xa5   : > { %v525_v28 = vmul.f32 -1.442695, %v794_v22  ;;  %v527_v29 = vmul.f32 -1.442695, %v796_v23 }
  0xa6   : > { %v593_v30 = vpop.eup %592  ;;  %v522_v33 = vmul.f32 -1.442695, %v798_v26  ;;  %v524_v35 = vmul.f32 -1.442695, %v800_v27 }
  0xa7   : > { %v595_v31 = vpop.eup %594  ;;  %v283_v32 = vadd.f32 1.0, %v593_v30  ;;  %596 = vpow2.f32 %v525_v28 }
  0xa8   : > { %v285_v34 = vadd.f32 1.0, %v595_v31  ;;  %598 = vpow2.f32 %v527_v29 }
  0xa9   : > { %600 = vrcp.f32 %v283_v32  ;;  %v300_v44 = vand.u32 2147483647, %v283_v32  ;;  %v302_v45 = vand.u32 2147483648, %v283_v32  ;;  %vm296_vm2 = vweird.f32 %v283_v32 }
  0xaa   : > { %602 = vrcp.f32 %v285_v34  ;;  %v250_v36 = vpop.f32.mrf.mxu2  ;;  %v256_v37 = vpop.f32.mrf.mxu3  ;;  %v330_v52 = vand.u32 2147483647, %v285_v34  ;;  %vm326_vm3 = vweird.f32 %v285_v34  ;;  %v332_v56 = vand.u32 2147483648, %v285_v34 }
  0xab   : > { %604 = vpow2.f32 %v522_v33  ;;  %v806_v38 = vadd.f32 %v591_v13, %v250_v36  ;;  %v808_v40 = vadd.f32 %v591_v13, %v256_v37  ;;  %vm819_vm4 = vcmp.eq.f32.partialorder %v300_v44, 8.507059e+37 }
  0xac   : > { %606 = vpow2.f32 %v524_v35  ;;  %v303_v58 = vor.u32 1.1754944e-38, %v302_v45  ;;  %vm827_vm7 = vcmp.eq.f32.partialorder %v330_v52, 8.507059e+37  ;;  %v333_v3 = vor.u32 1.1754944e-38, %v332_v56 }
  0xad   : > { %v597_v39 = vpop.eup %596  ;;  %v526_v47 = vmul.f32 -1.442695, %v806_v38  ;;  %v528_v53 = vmul.f32 -1.442695, %v808_v40 }
  0xae   : > { %v599_v41 = vpop.eup %598  ;;  %v810_v42 = vadd.f32 1.0, %v597_v39 }
  0xaf   : > { %v601_v43 = vpop.eup %600  ;;  %v812_v46 = vadd.f32 1.0, %v599_v41 }
  0xb0   : > { %v603_v48 = vpop.eup %602  ;;  %v292_v49 = vmul.f32 %v601_v43, %v283_v32  ;;  %608 = vrcp.f32 %v810_v42  ;;  %vm297_vm5 = vweird.f32 %v601_v43  ;;  %v360_v4 = vand.u32 2147483647, %v810_v42 }
  0xb1   : > { %v605_v50 = vpop.eup %604  ;;  %v322_v51 = vmul.f32 %v603_v48, %v285_v34  ;;  %610 = vrcp.f32 %v812_v46  ;;  %vm327_vm6 = vweird.f32 %v603_v48  ;;  %vm298_vm8 = vmor %vm296_vm2, %vm297_vm5  ;;  %vm356_vm9 = vweird.f32 %v810_v42 }
  0xb2   : > { %v607_v54 = vpop.eup %606  ;;  %v293_v55 = vsub.f32 1.0, %v292_v49  ;;  %612 = vpow2.f32 %v526_v47  ;;  %v823_v61 = vadd.f32 1.0, %v605_v50  ;;  %v362_v7 = vand.u32 2147483648, %v810_v42  ;;  %vm328_vm10 = vmor %vm326_vm3, %vm327_vm6 }
  0xb3   : > { %v323_v59 = vsub.f32 1.0, %v322_v51  ;;  %v825_v62 = vadd.f32 1.0, %v607_v54  ;;  %614 = vpow2.f32 %v528_v53  ;;  %v390_v10 = vand.u32 2147483647, %v812_v46 }
  0xb4   : > { %v294_v60 = vmul.f32 %v601_v43, %v293_v55  ;;  %616 = vrcp.f32 %v823_v61  ;;  %v392_v11 = vand.u32 2147483648, %v812_v46  ;;  %vm852_vm11 = vcmp.eq.f32.partialorder %v360_v4, 8.507059e+37 }
  0xb5   : > { %v324_v63 = vmul.f32 %v603_v48, %v323_v59  ;;  %618 = vrcp.f32 %v825_v62  ;;  %vm386_vm12 = vweird.f32 %v812_v46  ;;  %vm862_vm14 = vcmp.eq.f32.partialorder %v390_v10, 8.507059e+37 }
  0xb6   : > { %v609_v1 = vpop.eup %608  ;;  %v295_v2 = vadd.f32 %v601_v43, %v294_v60  ;;  %v393_v32 = vor.u32 1.1754944e-38, %v392_v11  ;;  %vm311_vm1 = vweird.f32 %v823_v61  ;;  %v315_v37 = vand.u32 2147483647, %v823_v61 }
  0xb7   : > { %v325_v5 = vadd.f32 %v603_v48, %v324_v63  ;;  %v352_v6 = vmul.f32 %v609_v1, %v810_v42  ;;  %v611_v8 = vpop.eup %610  ;;  %vm357_vm13 = vweird.f32 %v609_v1  ;;  %v317_v42 = vand.u32 2147483648, %v823_v61 }
  0xb8   : > { %v299_v9 = vsel %vm298_vm8, %v601_v43, %v295_v2  ;;  %v613_v12 = vpop.eup %612  ;;  %v382_v18 = vmul.f32 %v611_v8, %v812_v46  ;;  %vm387_vm15 = vweird.f32 %v611_v8  ;;  %vm358_vm0 = vmor %vm356_vm9, %vm357_vm13  ;;  %v345_v53 = vand.u32 2147483647, %v825_v62 }
  0xb9   : > { %v304_v13 = vsel %vm819_vm4, %v303_v58, %v299_v9  ;;  %v329_v14 = vsel %vm328_vm10, %v603_v48, %v325_v5  ;;  %v353_v15 = vsub.f32 1.0, %v352_v6  ;;  %v615_v24 = vpop.eup %614  ;;  %v866_v33 = vadd.f32 1.0, %v613_v12  ;;  %vm388_vm2 = vmor %vm386_vm12, %vm387_vm15 }
  0xba   : > { %v411_v19 = vmul.f32 %v304_v13, %v788_v16  ;;  %v334_v20 = vsel %vm827_vm7, %v333_v3, %v329_v14  ;;  %v383_v29 = vsub.f32 1.0, %v382_v18  ;;  %v617_v30 = vpop.eup %616  ;;  %v363_v16 = vor.u32 1.1754944e-38, %v362_v7 }
  0xbb   : > { %v413_v25 = vmul.f32 %v334_v20, %v790_v17  ;;  %v354_v28 = vmul.f32 %v609_v1, %v353_v15  ;;  %v307_v35 = vmul.f32 %v617_v30, %v823_v61  ;;  %v619_v36 = vpop.eup %618  ;;  %620 = vrcp.f32 %v866_v33 }
  0xbc   : > { %419 = vst [vmem:[%s859_s25] sm:$0xff] %v411_v19  ;;  %v384_v17 = vmul.f32 %v611_v8, %v383_v29  ;;  %v876_v39 = vadd.f32 1.0, %v615_v24  ;;  %v337_v45 = vmul.f32 %v619_v36, %v825_v62  ;;  %vm312_vm3 = vweird.f32 %v617_v30 }
  0xbd   : > { %421 = vst [vmem:[%s859_s25 + $0x10] sm:$0xff] %v413_v25  ;;  %v355_v34 = vadd.f32 %v609_v1, %v354_v28  ;;  %v308_v44 = vsub.f32 1.0, %v307_v35  ;;  %vm341_vm4 = vweird.f32 %v825_v62  ;;  %v347_v54 = vand.u32 2147483648, %v825_v62  ;;  %vm313_vm6 = vmor %vm311_vm1, %vm312_vm3 }
  0xbe   : > { %v385_v43 = vadd.f32 %v611_v8, %v384_v17  ;;  %v338_v51 = vsub.f32 1.0, %v337_v45  ;;  %622 = vrcp.f32 %v876_v39  ;;  %vm342_vm5 = vweird.f32 %v619_v36 }
  0xbf   : > { %v359_v41 = vsel %vm358_vm0, %v609_v1, %v355_v34  ;;  %v309_v50 = vmul.f32 %v617_v30, %v308_v44  ;;  %v318_v57 = vor.u32 1.1754944e-38, %v317_v42  ;;  %vm316_vm7 = vcmp.eq.f32.partialorder %v315_v37, 8.507059e+37  ;;  %vm343_vm8 = vmor %vm341_vm4, %vm342_vm5 }
  0xc0   : > { %v364_v47 = vsel %vm852_vm11, %v363_v16, %v359_v41  ;;  %v389_v49 = vsel %vm388_vm2, %v611_v8, %v385_v43  ;;  %v339_v56 = vmul.f32 %v619_v36, %v338_v51  ;;  %vm346_vm9 = vcmp.eq.f32.partialorder %v345_v53, 8.507059e+37 }
  0xc1   : > { %v415_v48 = vmul.f32 %v364_v47, %v794_v22  ;;  %v394_v52 = vsel %vm862_vm14, %v393_v32, %v389_v49  ;;  %v310_v55 = vadd.f32 %v617_v30, %v309_v50  ;;  %v621_v22 = vpop.eup %620  ;;  %v375_v4 = vand.u32 2147483647, %v866_v33 }
  0xc2   : > { %v417_v46 = vmul.f32 %v394_v52, %v796_v23  ;;  %v340_v59 = vadd.f32 %v619_v36, %v339_v56  ;;  %v367_v60 = vmul.f32 %v621_v22, %v866_v33  ;;  %v348_v23 = vor.u32 1.1754944e-38, %v347_v54 }
  0xc3   : > { %423 = vst [vmem:[%s859_s25 + $0x20] sm:$0xff] %v415_v48  ;;  %v314_v58 = vsel %vm313_vm6, %v617_v30, %v310_v55  ;;  %v377_v5 = vand.u32 2147483648, %v866_v33  ;;  %vm372_vm10 = vweird.f32 %v621_v22  ;;  %vm371_vm11 = vweird.f32 %v866_v33 }
  0xc4   : > { %425 = vst [vmem:[%s859_s25 + $0x30] sm:$0xff] %v417_v46  ;;  %v319_v63 = vsel %vm316_vm7, %v318_v57, %v314_v58  ;;  %v344_v1 = vsel %vm343_vm8, %v619_v36, %v340_v59  ;;  %v368_v61 = vsub.f32 1.0, %v367_v60  ;;  %v623_v2 = vpop.eup %622  ;;  %vm373_vm12 = vmor %vm371_vm11, %vm372_vm10  ;;  %vm376_vm13 = vcmp.eq.f32.partialorder %v375_v4, 8.507059e+37 }
  0xc5   : > { %v412_v0 = vmul.f32 %v319_v63, %v798_v26  ;;  %v349_v3 = vsel %vm346_vm9, %v348_v23, %v344_v1  ;;  %v397_v62 = vmul.f32 %v623_v2, %v876_v39  ;;  %v378_v9 = vor.u32 1.1754944e-38, %v377_v5 }
  0xc6   : > { %v414_v6 = vmul.f32 %v349_v3, %v800_v27  ;;  %v369_v7 = vmul.f32 %v621_v22, %v368_v61  ;;  %v407_v10 = vand.u32 2147483648, %v876_v39  ;;  %vm402_vm14 = vweird.f32 %v623_v2 }
  0xc7   : > { %420 = vst [vmem:[%s859_s25 + $0x8] sm:$0xff] %v412_v0  ;;  %v398_v26 = vsub.f32 1.0, %v397_v62  ;;  %v405_v12 = vand.u32 2147483647, %v876_v39  ;;  %vm401_vm15 = vweird.f32 %v876_v39 }
  0xc8   : > { %422 = vst [vmem:[%s859_s25 + $0x18] sm:$0xff] %v414_v6  ;;  %v370_v8 = vadd.f32 %v621_v22, %v369_v7  ;;  %vm403_vm0 = vmor %vm401_vm15, %vm402_vm14  ;;  %v408_v18 = vor.u32 1.1754944e-38, %v407_v10 }
  0xc9   : > { %v399_v11 = vmul.f32 %v623_v2, %v398_v26  ;;  %vm406_vm1 = vcmp.eq.f32.partialorder %v405_v12, 8.507059e+37 }
  0xca   : > { %v374_v27 = vsel %vm373_vm12, %v621_v22, %v370_v8 }
  0xcb   : > { %v379_v13 = vsel %vm376_vm13, %v378_v9, %v374_v27  ;;  %v400_v15 = vadd.f32 %v623_v2, %v399_v11 }
  0xcc   : > { %v416_v14 = vmul.f32 %v379_v13, %v806_v38 }
  0xcd   : > { %v404_v19 = vsel %vm403_vm0, %v623_v2, %v400_v15 }
  0xce   : > { %424 = vst [vmem:[%s859_s25 + $0x28] sm:$0xff] %v416_v14  ;;  %v409_v20 = vsel %vm406_vm1, %v408_v18, %v404_v19 }
  0xcf   : > { %v418_v21 = vmul.f32 %v409_v20, %v808_v40 }
  0xd1   : > { %426 = vst [vmem:[%s859_s25 + $0x38] sm:$0xff] %v418_v21 }
  0xd2   : > { %651 = shalt.err (!%p648_p3)
}
  0xd3   : > { %s688_s17 = smov 128   ;;  %s689_s19 = smov 8  }
  0xd4   : > { %550 = dma.vmem_to_hbm [thread:$0]  (%p748_p5), %s441_s16, 1024, %s443_s30, %s428_s4, %s688_s17, %s688_s17, %s689_s19  }
  0xd5 PF: > { %p556_p4 = scmp.ge.s32.totalorder %s686_s15, 2  ;;  %s457_s20 = sand.u32 1, %s674_s12  }
  0xd6   : > { %s458_s24 = scalar_lea.sflag [#allocation3], %s457_s20 }
  0xd7   : > { %p553_p7 = pnand %p556_p4, %p752_p6 }
  0xd9   : > { %p554_p8 = pneg %p553_p7 }
  0xdb   : > { %669 = dma.done.wait (%p554_p8), %s458_s24, 1024  }
  0xdc   : > { %671 = vsyncadd (%p554_p8), %s458_s24, 4294966272  ;;  %p13_p9 = scmp.ge.s32.totalorder %s735_s18, 4   ;;  %s963_s12 = smov %s678_s13 }
  0xdd   : > { %s964_s13 = smov %s682_s14  ;;  %s965_s14 = smov %s746_s21 }
  0xde   : > { %s966_s15 = smov %s735_s18  ;;  %15 = sbr.rel (!%p13_p9) target bundleno = 3 (0x3), region = 67 }
  0xe3   :  { %464 = vsyncpa [#allocation3], 1 }
  0xe4   :  { %466 = vsyncpa [#allocation3 + $0x1], 1 }

</bundles_post_ra>
